<compile_context>
chip_gen: v5e
topology: v5e:2x2
jax: 0.10.0
libtpu: 0.0.40
codegen_flags: <defaults>
</compile_context>

<pallas_src>
import numpy as np
import jax
import jax.numpy as jnp
from jax import lax
from jax.experimental import pallas as pl
from jax.experimental.pallas import tpu as pltpu

VOCAB = 64
EMBED_DIM = 32
ENCODE_DIM = 32
BATCH = 2

LANE = 128      # lane-dense feature axis (ENCODE_DIM zero-padded to 128)
SUBLANE = 8


def _ceil_to(x, m):
    return ((x + m - 1) // m) * m


# ---------------------------------------------------------------------------
# Fused kernel: one grid step == one tree LEVEL (all calls at that depth).
# ---------------------------------------------------------------------------
def _tree_encoder_kernel(tok_ref,      # (maxr, 1)  i32: token per node row (-1 pad)
                         brow_ref,     # (maxr, 1)  i32: batch row per node row (-1 pad)
                         pprev_ref,    # (1, maxr)  i32: parent row (in THIS level) of
                                       #                 each row of the PREVIOUS level
                         table_ref,    # (vocab_pad, LANE) f32: T = emb @ W_c + b_c
                         floor_ref,    # (bs_pad, LANE) f32: implicit-zero clamp
                         acc_ref,      # out (bs_pad, LANE): running max (resident)
                         bc_ref):      # scratch (maxr, LANE): previous level's result
    s = pl.program_id(0)
    maxr = bc_ref.shape[0]
    vocab_pad = table_ref.shape[0]
    bs_pad = acc_ref.shape[0]

    @pl.when(s == 0)
    def _init():
        acc_ref[...] = jnp.full(acc_ref.shape, -jnp.inf, dtype=acc_ref.dtype)
        bc_ref[...] = jnp.zeros_like(bc_ref)      # no children below level 0

    # ---- batch_current = W_c(embedding(tokens))  ==  onehot(tok) @ T --------
    tok = tok_ref[...]
    onehot = (lax.broadcasted_iota(jnp.int32, (maxr, vocab_pad), 1)
              == tok).astype(jnp.float32)                       # -1 rows -> all-zero
    bc_cur = jnp.dot(onehot, table_ref[...],
                     preferred_element_type=jnp.float32)        # (maxr, LANE)

    # ---- batch_current += zeros.index_copy(children_index, child_result) ----
    # The children of this level were computed at the previous grid step and
    # still sit in bc_ref; pprev[r] is the row of THIS level that child-row r
    # feeds (two child groups of a node simply sum, as in the reference).
    pprev = pprev_ref[...]
    scat = (lax.broadcasted_iota(jnp.int32, (maxr, maxr), 0)
            == pprev).astype(jnp.float32)                       # -1 cols -> no add
    bc_cur = bc_cur + jnp.dot(scat, bc_ref[...],
                              preferred_element_type=jnp.float32)

    bc_ref[...] = bc_cur          # consumed by the (shallower) next level

    # ---- node_list entries + torch.max fused: running per-batch-row max -----
    brow = brow_ref[...]
    cand_rows = []
    for b in range(bs_pad):       # static unroll, bs_pad is small
        vals = jnp.where(brow == b, bc_cur, -jnp.inf)           # (maxr, LANE)
        cand_rows.append(jnp.max(vals, axis=0, keepdims=True))  # (1, LANE)
    cand = jnp.concatenate(cand_rows, axis=0)                   # (bs_pad, LANE)
    acc_ref[...] = jnp.maximum(acc_ref[...], cand)

    # ---- implicit 0 rows of node_list entries that skip a batch element -----
    @pl.when(s == pl.num_programs(0) - 1)
    def _final():
        acc_ref[...] = jnp.maximum(acc_ref[...], floor_ref[...])


def _tree_encoder_call(tok, brow, pprev, table, floor):
    nlev_pad, maxr_pad, _ = tok.shape
    vocab_pad, lane = table.shape
    bs_pad = floor.shape[0]

    # Explicit VMEM budget: residents + scratch + double-buffered index streams.
    resident = 4 * (vocab_pad * lane + 2 * bs_pad * lane + maxr_pad * lane)
    streamed = 4 * 2 * (2 * maxr_pad * lane)          # generous (lane-padded i32)
    vmem_limit = int(max(2 * (resident + streamed), 4 << 20))

    grid_spec = pltpu.PrefetchScalarGridSpec(
        num_scalar_prefetch=0,
        grid=(nlev_pad,),
        in_specs=[
            pl.BlockSpec((None, maxr_pad, 1), lambda s: (s, 0, 0)),   # tokens
            pl.BlockSpec((None, maxr_pad, 1), lambda s: (s, 0, 0)),   # batch rows
            pl.BlockSpec((None, 1, maxr_pad), lambda s: (s, 0, 0)),   # parent rows (prev level)
            pl.BlockSpec((vocab_pad, lane), lambda s: (0, 0)),        # fused table (resident)
            pl.BlockSpec((bs_pad, lane), lambda s: (0, 0)),           # zero floor (resident)
        ],
        out_specs=pl.BlockSpec((bs_pad, lane), lambda s: (0, 0)),     # running max (resident)
        scratch_shapes=[pltpu.VMEM((maxr_pad, lane), jnp.float32)],   # previous level's bc
    )
    return pl.pallas_call(
        _tree_encoder_kernel,
        out_shape=jax.ShapeDtypeStruct((bs_pad, lane), jnp.float32),
        grid_spec=grid_spec,
        compiler_params=pltpu.CompilerParams(
            dimension_semantics=("arbitrary",),    # levels are a dependency chain
            vmem_limit_bytes=vmem_limit),
    )(tok, brow, pprev, table, floor)


# ---------------------------------------------------------------------------
# Module wrapper mirroring BatchTreeEncoder.forward
# ---------------------------------------------------------------------------
class BatchTreeEncoderPallas:
    def __init__(self, vocab_size, embedding_dim, encode_dim, key):
        k_emb, k_w, k_b = jax.random.split(key, 3)
        self.vocab_size = vocab_size
        self.embedding_dim = embedding_dim
        self.encode_dim = encode_dim
        self.embedding = 0.1 * jax.random.normal(
            k_emb, (vocab_size, embedding_dim), jnp.float32)
        # torch nn.Linear stores (out, in); we keep the transposed (in, out).
        self.w_c = 0.1 * jax.random.normal(
            k_w, (embedding_dim, encode_dim), jnp.float32)
        self.b_c = 0.1 * jax.random.normal(k_b, (1, encode_dim), jnp.float32)
        # TODO(synk): W_l / W_r and self.activation exist in the PyTorch
        # __init__ but are never used by its forward(); omitted here.

        # Fused, lane-padded gather table T = embedding @ W_c + b_c, built ONCE.
        self.vocab_pad = _ceil_to(max(vocab_size, SUBLANE), LANE)
        table = self.embedding @ self.w_c + self.b_c         # (vocab, encode)
        table_pad = np.zeros((self.vocab_pad, LANE), np.float32)
        table_pad[:vocab_size, :encode_dim] = np.asarray(table)
        self._table = jnp.asarray(table_pad)

    # -- host-side flattening of traverse_mul (pure Python index bookkeeping) -
    def _flatten(self, x, bs):
        calls = []

        def rec(node, batch_index, depth):
            size = len(node)
            if not size:
                return None
            current_node = [node[i][0] for i in range(size)]
            children_index, children = [], []
            for i in range(size):
                temp = node[i][1:3]
                for j in range(len(temp)):
                    if temp[j][0] != -1:
                        if len(children_index) <= j:
                            children_index.append([i])
                            children.append([temp[j]])
                        else:
                            children_index[j].append(i)
                            children[j].append(temp[j])
            child_entries = []
            for c in range(len(children)):
                cc = rec(children[c],
                         [batch_index[i] for i in children_index[c]], depth + 1)
                if cc is not None:
                    child_entries.append((cc, children_index[c]))
            cid = len(calls)
            calls.append(dict(depth=depth, tokens=current_node,
                              batch=list(batch_index), children=child_entries))
            return cid

        rec(x, list(range(bs)), 0)
        return calls

    def forward(self, x, bs):
        calls = self._flatten(x, bs)
        nlevels = max(c["depth"] for c in calls) + 1

        # Level-batch: concatenate every call at the same depth into one block.
        level_calls = [[] for _ in range(nlevels)]
        for cid, c in enumerate(calls):
            level_calls[c["depth"]].append(cid)
        row_off, level_rows = {}, [0] * nlevels
        for d in range(nlevels):
            off = 0
            for cid in level_calls[d]:
                row_off[cid] = off
                off += len(calls[cid]["tokens"])
            level_rows[d] = off

        # Static buckets (multiple-of-8 rows, multiple-of-2 levels) so different
        # trees reuse the same Mosaic executable without pow2 padding blowup.
        maxr_pad = _ceil_to(max(max(level_rows), SUBLANE), SUBLANE)
        nlev_pad = _ceil_to(nlevels, 2)
        bs_pad = _ceil_to(max(bs, SUBLANE), SUBLANE)

        # Grid step s processes depth (nlevels - 1 - s): deepest level first.
        def step_of(depth):
            return nlevels - 1 - depth

        tok = np.full((nlev_pad, maxr_pad, 1), -1, np.int32)
        brow = np.full((nlev_pad, maxr_pad, 1), -1, np.int32)
        pprev = np.full((nlev_pad, 1, maxr_pad), -1, np.int32)

        for cid, c in enumerate(calls):
            d = c["depth"]
            s = step_of(d)
            off = row_off[cid]
            for i, t in enumerate(c["tokens"]):
                tok[s, off + i, 0] = t
                brow[s, off + i, 0] = c["batch"][i]
            # A child call sits at depth d+1 == grid step s-1; its row j feeds
            # row (off + children_index[j]) of THIS level.
            for child_cid, rows_in_parent in c["children"]:
                c_off = row_off[child_cid]
                for j, parent_i in enumerate(rows_in_parent):
                    pprev[s, 0, c_off + j] = off + parent_i

        # Implicit-zero floor: each node_list entry contributes 0 for every
        # batch row it does NOT write, so row b is clamped at 0 unless EVERY
        # call writes it (matches zeros().index_copy + torch.max).
        floor = np.zeros((bs_pad, LANE), np.float32)
        for b in range(bs):
            if all(b in set(i for i in c["batch"] if i != -1) for c in calls):
                floor[b, :] = -np.inf

        out = _tree_encoder_call(jnp.asarray(tok), jnp.asarray(brow),
                                 jnp.asarray(pprev), self._table,
                                 jnp.asarray(floor))
        return out[:bs, :self.encode_dim]

    # -- pure-JAX reference: literal port of the PyTorch recursion ------------
    def forward_reference(self, x, bs):
        node_list = []

        def traverse(node, batch_index):
            size = len(node)
            if not size:
                return None
            current_node = [node[i][0] for i in range(size)]
            children_index, children = [], []
            for i in range(size):
                temp = node[i][1:3]
                for j in range(len(temp)):
                    if temp[j][0] != -1:
                        if len(children_index) <= j:
                            children_index.append([i])
                            children.append([temp[j]])
                        else:
                            children_index[j].append(i)
                            children[j].append(temp[j])
            ids = jnp.asarray(current_node, jnp.int32)
            batch_current = self.embedding[ids] @ self.w_c + self.b_c
            for c in range(len(children)):
                tree = traverse(children[c],
                                [batch_index[i] for i in children_index[c]])
                if tree is not None:
                    idx = jnp.asarray(children_index[c], jnp.int32)
                    batch_current = batch_current.at[idx].add(tree)
            b_in = jnp.asarray([i for i in batch_index if i != -1], jnp.int32)
            node_list.append(jnp.zeros((bs, self.encode_dim), jnp.float32)
                             .at[b_in].set(batch_current))
            return batch_current

        traverse(x, list(range(bs)))
        return jnp.max(jnp.stack(node_list), axis=0)


# ---------------------------------------------------------------------------
if __name__ == "__main__":
    def leaf(tok):
        return [tok, [-1], [-1]]

    # ASTNN node encoding: [token, child0, child1]; a child of [-1] is missing.
    tree0 = [5, [3, leaf(7), leaf(2)], leaf(9)]
    tree1 = [4, leaf(1), [6, leaf(8), [-1]]]
    x = [tree0, tree1]                       # list of BATCH root nodes

    enc = BatchTreeEncoderPallas(VOCAB, EMBED_DIM, ENCODE_DIM,
                                 jax.random.PRNGKey(0))

    out = jax.block_until_ready(enc.forward(x, BATCH))
    ref = jax.block_until_ready(enc.forward_reference(x, BATCH))

    assert out.shape == (BATCH, ENCODE_DIM), out.shape
    assert jnp.allclose(out, ref, rtol=1e-3, atol=1e-3), (
        float(jnp.max(jnp.abs(out - ref))))
    print("KERNEL_OK")
</pallas_src>

<mosaic_0001>
module attributes {stable_mosaic.version = 11 : i64} {
  func.func @_tree_encoder_kernel(%arg0: i32, %arg1: memref<1x8x1xi32, #tpu.memory_space<vmem>>, %arg2: memref<1x8x1xi32, #tpu.memory_space<vmem>>, %arg3: memref<1x1x8xi32, #tpu.memory_space<vmem>>, %arg4: memref<128x128xf32, #tpu.memory_space<vmem>>, %arg5: memref<8x128xf32, #tpu.memory_space<vmem>>, %arg6: memref<8x128xf32, #tpu.memory_space<vmem>>, %arg7: memref<8x128xf32, #tpu.memory_space<vmem>>) attributes {dimension_semantics = [#tpu.dimension_semantics<arbitrary>], iteration_bounds = array<i64: 4>, scalar_prefetch = 0 : i64, scratch_operands = 1 : i64, tpu.core_type = #tpu.core_type<tc>, window_params = [{transform_indices = @transform_0, window_bounds = array<i64: 1, 8, 1>}, {transform_indices = @transform_1, window_bounds = array<i64: 1, 8, 1>}, {transform_indices = @transform_2, window_bounds = array<i64: 1, 1, 8>}, {pipeline_mode = #tpu.pipeline_mode<synchronous>, transform_indices = @transform_3, window_bounds = array<i64: 128, 128>}, {pipeline_mode = #tpu.pipeline_mode<synchronous>, transform_indices = @transform_4, window_bounds = array<i64: 8, 128>}, {pipeline_mode = #tpu.pipeline_mode<synchronous>, transform_indices = @transform_5, window_bounds = array<i64: 8, 128>}]} {
    %c0_i32 = arith.constant 0 : i32
    %0 = arith.cmpi eq, %arg0, %c0_i32 : i32
    %1 = arith.extui %0 : i1 to i32
    %c0_i32_0 = arith.constant 0 : i32
    %2 = arith.cmpi ne, %1, %c0_i32_0 : i32
    scf.if %2 {
      %cst_39 = arith.constant 0xFF800000 : f32
      %96 = vector.broadcast %cst_39 : f32 to vector<8x128xf32>
      %c0_40 = arith.constant 0 : index
      %c0_41 = arith.constant 0 : index
      %97 = vector.load %arg6[%c0_40, %c0_41] : memref<8x128xf32, #tpu.memory_space<vmem>>, vector<8x128xf32>
      tpu.vector_store %arg6[%c0_40, %c0_41], %96 {strides = array<i32>} : memref<8x128xf32, #tpu.memory_space<vmem>>, vector<8x128xf32>,
      %cst_42 = arith.constant 0.000000e+00 : f32
      %98 = vector.broadcast %cst_42 : f32 to vector<8x128xf32>
      %c0_43 = arith.constant 0 : index
      %c0_44 = arith.constant 0 : index
      %99 = vector.load %arg7[%c0_43, %c0_44] : memref<8x128xf32, #tpu.memory_space<vmem>>, vector<8x128xf32>
      tpu.vector_store %arg7[%c0_43, %c0_44], %98 {strides = array<i32>} : memref<8x128xf32, #tpu.memory_space<vmem>>, vector<8x128xf32>,
    } else {
    }
    %c0 = arith.constant 0 : index
    %c0_1 = arith.constant 0 : index
    %c0_2 = arith.constant 0 : index
    %3 = vector.load %arg1[%c0, %c0_1, %c0_2] : memref<1x8x1xi32, #tpu.memory_space<vmem>>, vector<1x8x1xi32>
    %4 = vector.shape_cast %3 : vector<1x8x1xi32> to vector<8x1xi32>
    %5 = tpu.iota {dimensions = array<i32: 1>} : vector<8x128xi32>
    %6 = vector.broadcast %4 : vector<8x1xi32> to vector<8x128xi32>
    %7 = arith.cmpi eq, %5, %6 : vector<8x128xi32>
    %8 = arith.extui %7 : vector<8x128xi1> to vector<8x128xi32>
    %9 = arith.sitofp %8 : vector<8x128xi32> to vector<8x128xf32>
    %c0_3 = arith.constant 0 : index
    %c0_4 = arith.constant 0 : index
    %10 = vector.load %arg4[%c0_3, %c0_4] : memref<128x128xf32, #tpu.memory_space<vmem>>, vector<128x128xf32>
    %cst = arith.constant dense<0.000000e+00> : vector<8x128xf32>
    %11 = tpu.matmul %9, %10, %cst {dimension_numbers = #tpu.dot_dimension_numbers<[1], [0], [0], [1], [0, 0, 1, 1], [], []>} : vector<8x128xf32>, vector<128x128xf32>, vector<8x128xf32> -> vector<8x128xf32>
    %c0_5 = arith.constant 0 : index
    %c0_6 = arith.constant 0 : index
    %c0_7 = arith.constant 0 : index
    %12 = vector.load %arg3[%c0_5, %c0_6, %c0_7] : memref<1x1x8xi32, #tpu.memory_space<vmem>>, vector<1x1x8xi32>
    %13 = vector.shape_cast %12 : vector<1x1x8xi32> to vector<1x8xi32>
    %14 = tpu.iota {dimensions = array<i32: 0>} : vector<8x8xi32>
    %15 = vector.broadcast %13 : vector<1x8xi32> to vector<8x8xi32>
    %16 = arith.cmpi eq, %14, %15 : vector<8x8xi32>
    %17 = arith.extui %16 : vector<8x8xi1> to vector<8x8xi32>
    %18 = arith.sitofp %17 : vector<8x8xi32> to vector<8x8xf32>
    %c0_8 = arith.constant 0 : index
    %c0_9 = arith.constant 0 : index
    %19 = vector.load %arg7[%c0_8, %c0_9] : memref<8x128xf32, #tpu.memory_space<vmem>>, vector<8x128xf32>
    %cst_10 = arith.constant dense<0.000000e+00> : vector<8x128xf32>
    %20 = tpu.matmul %18, %19, %cst_10 {dimension_numbers = #tpu.dot_dimension_numbers<[1], [0], [0], [1], [0, 0, 1, 1], [], []>} : vector<8x8xf32>, vector<8x128xf32>, vector<8x128xf32> -> vector<8x128xf32>
    %21 = arith.addf %11, %20 : vector<8x128xf32>
    %c0_11 = arith.constant 0 : index
    %c0_12 = arith.constant 0 : index
    %22 = vector.load %arg7[%c0_11, %c0_12] : memref<8x128xf32, #tpu.memory_space<vmem>>, vector<8x128xf32>
    tpu.vector_store %arg7[%c0_11, %c0_12], %21 {strides = array<i32>} : memref<8x128xf32, #tpu.memory_space<vmem>>, vector<8x128xf32>,
    %c0_13 = arith.constant 0 : index
    %c0_14 = arith.constant 0 : index
    %c0_15 = arith.constant 0 : index
    %23 = vector.load %arg2[%c0_13, %c0_14, %c0_15] : memref<1x8x1xi32, #tpu.memory_space<vmem>>, vector<1x8x1xi32>
    %24 = vector.shape_cast %23 : vector<1x8x1xi32> to vector<8x1xi32>
    %c0_i32_16 = arith.constant 0 : i32
    %25 = vector.broadcast %c0_i32_16 : i32 to vector<8x1xi32>
    %26 = arith.cmpi eq, %24, %25 : vector<8x1xi32>
    %cst_17 = arith.constant 0xFF800000 : f32
    %27 = vector.shape_cast %26 : vector<8x1xi1> to vector<8x1xi1>
    %28 = vector.broadcast %27 : vector<8x1xi1> to vector<8x128xi1>
    %29 = vector.broadcast %cst_17 : f32 to vector<8x128xf32>
    %30 = arith.select %28, %21, %29 : vector<8x128xi1>, vector<8x128xf32>
    %cst_18 = arith.constant dense<0xFF800000> : vector<128xf32>
    %31 = vector.multi_reduction <maximumf>, %30, %cst_18 [0] : vector<8x128xf32> to vector<128xf32>
    %32 = vector.shape_cast %31 : vector<128xf32> to vector<1x128xf32>
    %c1_i32 = arith.constant 1 : i32
    %33 = vector.broadcast %c1_i32 : i32 to vector<8x1xi32>
    %34 = arith.cmpi eq, %24, %33 : vector<8x1xi32>
    %cst_19 = arith.constant 0xFF800000 : f32
    %35 = vector.shape_cast %34 : vector<8x1xi1> to vector<8x1xi1>
    %36 = vector.broadcast %35 : vector<8x1xi1> to vector<8x128xi1>
    %37 = vector.broadcast %cst_19 : f32 to vector<8x128xf32>
    %38 = arith.select %36, %21, %37 : vector<8x128xi1>, vector<8x128xf32>
    %cst_20 = arith.constant dense<0xFF800000> : vector<128xf32>
    %39 = vector.multi_reduction <maximumf>, %38, %cst_20 [0] : vector<8x128xf32> to vector<128xf32>
    %40 = vector.shape_cast %39 : vector<128xf32> to vector<1x128xf32>
    %c2_i32 = arith.constant 2 : i32
    %41 = vector.broadcast %c2_i32 : i32 to vector<8x1xi32>
    %42 = arith.cmpi eq, %24, %41 : vector<8x1xi32>
    %cst_21 = arith.constant 0xFF800000 : f32
    %43 = vector.shape_cast %42 : vector<8x1xi1> to vector<8x1xi1>
    %44 = vector.broadcast %43 : vector<8x1xi1> to vector<8x128xi1>
    %45 = vector.broadcast %cst_21 : f32 to vector<8x128xf32>
    %46 = arith.select %44, %21, %45 : vector<8x128xi1>, vector<8x128xf32>
    %cst_22 = arith.constant dense<0xFF800000> : vector<128xf32>
    %47 = vector.multi_reduction <maximumf>, %46, %cst_22 [0] : vector<8x128xf32> to vector<128xf32>
    %48 = vector.shape_cast %47 : vector<128xf32> to vector<1x128xf32>
    %c3_i32 = arith.constant 3 : i32
    %49 = vector.broadcast %c3_i32 : i32 to vector<8x1xi32>
    %50 = arith.cmpi eq, %24, %49 : vector<8x1xi32>
    %cst_23 = arith.constant 0xFF800000 : f32
    %51 = vector.shape_cast %50 : vector<8x1xi1> to vector<8x1xi1>
    %52 = vector.broadcast %51 : vector<8x1xi1> to vector<8x128xi1>
    %53 = vector.broadcast %cst_23 : f32 to vector<8x128xf32>
    %54 = arith.select %52, %21, %53 : vector<8x128xi1>, vector<8x128xf32>
    %cst_24 = arith.constant dense<0xFF800000> : vector<128xf32>
    %55 = vector.multi_reduction <maximumf>, %54, %cst_24 [0] : vector<8x128xf32> to vector<128xf32>
    %56 = vector.shape_cast %55 : vector<128xf32> to vector<1x128xf32>
    %c4_i32 = arith.constant 4 : i32
    %57 = vector.broadcast %c4_i32 : i32 to vector<8x1xi32>
    %58 = arith.cmpi eq, %24, %57 : vector<8x1xi32>
    %cst_25 = arith.constant 0xFF800000 : f32
    %59 = vector.shape_cast %58 : vector<8x1xi1> to vector<8x1xi1>
    %60 = vector.broadcast %59 : vector<8x1xi1> to vector<8x128xi1>
    %61 = vector.broadcast %cst_25 : f32 to vector<8x128xf32>
    %62 = arith.select %60, %21, %61 : vector<8x128xi1>, vector<8x128xf32>
    %cst_26 = arith.constant dense<0xFF800000> : vector<128xf32>
    %63 = vector.multi_reduction <maximumf>, %62, %cst_26 [0] : vector<8x128xf32> to vector<128xf32>
    %64 = vector.shape_cast %63 : vector<128xf32> to vector<1x128xf32>
    %c5_i32 = arith.constant 5 : i32
    %65 = vector.broadcast %c5_i32 : i32 to vector<8x1xi32>
    %66 = arith.cmpi eq, %24, %65 : vector<8x1xi32>
    %cst_27 = arith.constant 0xFF800000 : f32
    %67 = vector.shape_cast %66 : vector<8x1xi1> to vector<8x1xi1>
    %68 = vector.broadcast %67 : vector<8x1xi1> to vector<8x128xi1>
    %69 = vector.broadcast %cst_27 : f32 to vector<8x128xf32>
    %70 = arith.select %68, %21, %69 : vector<8x128xi1>, vector<8x128xf32>
    %cst_28 = arith.constant dense<0xFF800000> : vector<128xf32>
    %71 = vector.multi_reduction <maximumf>, %70, %cst_28 [0] : vector<8x128xf32> to vector<128xf32>
    %72 = vector.shape_cast %71 : vector<128xf32> to vector<1x128xf32>
    %c6_i32 = arith.constant 6 : i32
    %73 = vector.broadcast %c6_i32 : i32 to vector<8x1xi32>
    %74 = arith.cmpi eq, %24, %73 : vector<8x1xi32>
    %cst_29 = arith.constant 0xFF800000 : f32
    %75 = vector.shape_cast %74 : vector<8x1xi1> to vector<8x1xi1>
    %76 = vector.broadcast %75 : vector<8x1xi1> to vector<8x128xi1>
    %77 = vector.broadcast %cst_29 : f32 to vector<8x128xf32>
    %78 = arith.select %76, %21, %77 : vector<8x128xi1>, vector<8x128xf32>
    %cst_30 = arith.constant dense<0xFF800000> : vector<128xf32>
    %79 = vector.multi_reduction <maximumf>, %78, %cst_30 [0] : vector<8x128xf32> to vector<128xf32>
    %80 = vector.shape_cast %79 : vector<128xf32> to vector<1x128xf32>
    %c7_i32 = arith.constant 7 : i32
    %81 = vector.broadcast %c7_i32 : i32 to vector<8x1xi32>
    %82 = arith.cmpi eq, %24, %81 : vector<8x1xi32>
    %cst_31 = arith.constant 0xFF800000 : f32
    %83 = vector.shape_cast %82 : vector<8x1xi1> to vector<8x1xi1>
    %84 = vector.broadcast %83 : vector<8x1xi1> to vector<8x128xi1>
    %85 = vector.broadcast %cst_31 : f32 to vector<8x128xf32>
    %86 = arith.select %84, %21, %85 : vector<8x128xi1>, vector<8x128xf32>
    %cst_32 = arith.constant dense<0xFF800000> : vector<128xf32>
    %87 = vector.multi_reduction <maximumf>, %86, %cst_32 [0] : vector<8x128xf32> to vector<128xf32>
    %88 = vector.shape_cast %87 : vector<128xf32> to vector<1x128xf32>
    %89 = tpu.concatenate %32, %40, %48, %56, %64, %72, %80, %88 in 0 : vector<1x128xf32>, vector<1x128xf32>, vector<1x128xf32>, vector<1x128xf32>, vector<1x128xf32>, vector<1x128xf32>, vector<1x128xf32>, vector<1x128xf32> -> vector<8x128xf32>
    %c0_33 = arith.constant 0 : index
    %c0_34 = arith.constant 0 : index
    %90 = vector.load %arg6[%c0_33, %c0_34] : memref<8x128xf32, #tpu.memory_space<vmem>>, vector<8x128xf32>
    %91 = arith.maximumf %90, %89 : vector<8x128xf32>
    %c0_35 = arith.constant 0 : index
    %c0_36 = arith.constant 0 : index
    %92 = vector.load %arg6[%c0_35, %c0_36] : memref<8x128xf32, #tpu.memory_space<vmem>>, vector<8x128xf32>
    tpu.vector_store %arg6[%c0_35, %c0_36], %91 {strides = array<i32>} : memref<8x128xf32, #tpu.memory_space<vmem>>, vector<8x128xf32>,
    %c3_i32_37 = arith.constant 3 : i32
    %93 = arith.cmpi eq, %arg0, %c3_i32_37 : i32
    %94 = arith.extui %93 : i1 to i32
    %c0_i32_38 = arith.constant 0 : i32
    %95 = arith.cmpi ne, %94, %c0_i32_38 : i32
    scf.if %95 {
      %c0_39 = arith.constant 0 : index
      %c0_40 = arith.constant 0 : index
      %96 = vector.load %arg6[%c0_39, %c0_40] : memref<8x128xf32, #tpu.memory_space<vmem>>, vector<8x128xf32>
      %c0_41 = arith.constant 0 : index
      %c0_42 = arith.constant 0 : index
      %97 = vector.load %arg5[%c0_41, %c0_42] : memref<8x128xf32, #tpu.memory_space<vmem>>, vector<8x128xf32>
      %98 = arith.maximumf %96, %97 : vector<8x128xf32>
      %c0_43 = arith.constant 0 : index
      %c0_44 = arith.constant 0 : index
      %99 = vector.load %arg6[%c0_43, %c0_44] : memref<8x128xf32, #tpu.memory_space<vmem>>, vector<8x128xf32>
      tpu.vector_store %arg6[%c0_43, %c0_44], %98 {strides = array<i32>} : memref<8x128xf32, #tpu.memory_space<vmem>>, vector<8x128xf32>,
    } else {
    }
    return
  }
  func.func @transform_0(%arg0: i32) -> (i32, i32, i32) {
    %c0_i32 = arith.constant 0 : i32
    %c0_i32_0 = arith.constant 0 : i32
    %c0_i32_1 = arith.constant 0 : i32
    return %arg0, %c0_i32, %c0_i32_0 : i32, i32, i32
  }
  func.func @transform_1(%arg0: i32) -> (i32, i32, i32) {
    %c0_i32 = arith.constant 0 : i32
    %c0_i32_0 = arith.constant 0 : i32
    %c0_i32_1 = arith.constant 0 : i32
    return %arg0, %c0_i32, %c0_i32_0 : i32, i32, i32
  }
  func.func @transform_2(%arg0: i32) -> (i32, i32, i32) {
    %c0_i32 = arith.constant 0 : i32
    %c0_i32_0 = arith.constant 0 : i32
    %c0_i32_1 = arith.constant 0 : i32
    return %arg0, %c0_i32, %c0_i32_0 : i32, i32, i32
  }
  func.func @transform_3(%arg0: i32) -> (i32, i32) {
    %c0_i32 = arith.constant 0 : i32
    %c0_i32_0 = arith.constant 0 : i32
    %c0_i32_1 = arith.constant 0 : i32
    return %c0_i32, %c0_i32_0 : i32, i32
  }
  func.func @transform_4(%arg0: i32) -> (i32, i32) {
    %c0_i32 = arith.constant 0 : i32
    %c0_i32_0 = arith.constant 0 : i32
    %c0_i32_1 = arith.constant 0 : i32
    return %c0_i32, %c0_i32_0 : i32, i32
  }
  func.func @transform_5(%arg0: i32) -> (i32, i32) {
    %c0_i32 = arith.constant 0 : i32
    %c0_i32_0 = arith.constant 0 : i32
    %c0_i32_1 = arith.constant 0 : i32
    return %c0_i32, %c0_i32_0 : i32, i32
  }
}

</mosaic_0001>

<bundles_post_ra>
// kernel: tpu_custom_call.1
= control target key start
LH: loop header
LB: loop body
LE: loop exit
PB: predicated region body
PF: predicated region fallthrough
CT: control target
= control target key end

     0   :  { %10 = vsyncpa [#allocation4], 0  ;;  %s790_s0 = inlined_call_operand.vmem [shape: s32[4,8,1], index: 0, kind: input, shape index: {}]   ;;  %s791_s1 = inlined_call_operand.vmem [shape: s32[4,8,1], index: 1, kind: input, shape index: {}]   ;;  %s792_s2 = inlined_call_operand.vmem [shape: s32[4,1,8], index: 2, kind: input, shape index: {}]   ;;  %s793_s3 = inlined_call_operand.hbm [shape: f32[128,128], index: 3, kind: input, shape index: {}]   ;;  %s794_s4 = inlined_call_operand.vmem [shape: f32[8,128], index: 4, kind: input, shape index: {}]   ;;  %s795_s5 = inlined_call_operand.hbm [shape: f32[8,128], index: 5, kind: output, shape index: {}]  }
   0x1   :  { %11 = vsyncpa [#allocation5], 0  ;;  %s719_s18 = smov 0  }
   0x2 LB: > { %s174_s21 = sshll.u32 %s793_s3, 4  ;;  %s728_s22 = sadd.s32 4294967295, %s678_s18   ;;  %s678_s18 = sphi %s719_s18, %s17_s18   ;;  %s175_s21 = int_to_ptr.hbm [resolvable:$true] %s174_s21 }
   0x3   : > { %p552_p0 = scmp.ge.s32.totalorder %s678_s18, 1  ;;  %p163_p1 = scmp.lt.s32.totalorder %s678_s18, 5 }
   0x4   : > { %p553_p2 = scmp.ne.s32.totalorder %s728_s22, 0  ;;  %p581_p3 = scmp.eq.s32.totalorder %s728_s22, 0 }
   0x5   : > { %p164_p4 = pnand %p552_p0, %p163_p1  ;;  %s680_s23 = smov [#allocation3]  }
   0x6   : > { %s176_s24 = sshll.u32 %s680_s23, 4  ;;  %s681_s25 = smov 128   ;;  %s177_s24 = int_to_ptr.vmem [resolvable:$true] %s176_s24 }
   0x7   : > { %p577_p5 = pneg %p164_p4  ;;  %s682_s26 = smov 8  }
   0x8   : > { %215 = sbr.rel (%p164_p4) target bundleno = 307 (0x133), region = 40 }
   0x9   : > { %p578_p6 = pnand %p581_p3, %p577_p5 }
   0xb   : > { %580 = dma.hbm_to_vmem [thread:$0]  (!%p578_p6), %s175_s21, 2048, %s177_s24, [#allocation4], %s681_s25, %s681_s25, %s682_s26  }
   0xd   : > { %669 = dma.done.wait (%p581_p3), [#allocation4], 2048  }
   0xe   : > { %671 = vsyncadd (%p581_p3), [#allocation4], 4294965248  ;;  %p245_p7 = scmp.lt.s32.totalorder %s728_s22, 3 }
   0xf   : > { %259 = sbr.rel (%p553_p2) target bundleno = 23 (0x17), region = 48 }
  0x10   : > { %s736_s27 = scalar_select %p245_p7, %s728_s22, 3 }
  0x12   : > { %s557_s28 = sshll.u32 %s736_s27, 3  ;;  %s255_s6 = scalar_lea.vmem %s792_s2, %s736_s27 }
  0x13   : > { %s248_s9 = scalar_lea.vmem %s790_s0, %s557_s28  ;;  %s252_s12 = scalar_lea.vmem %s791_s1, %s557_s28 }
  0x14   : > { %v683_v0 = vmov -inf   ;;  %v684_v1 = vmov 0.0  }
  0x15   : > { %260 = vst [vmem:[#allocation6] sm:$0xff] %v683_v0 }
  0x16   : > { %261 = vst [vmem:[#allocation2] sm:$0xff] %v684_v1 }
  0x17 PF: > { %v262_v2 = vld [vmem:[%s248_s9] sm:$0xff]  ;;  %v685_v5 = vmov 0   ;;  %v285_v6 = vld [vmem:[#allocation3 + $0x70] sm:$0xff]  ;;  %v284_v7 = vld [vmem:[#allocation3 + $0x68] sm:$0xff]  ;;  %v263_v24 = vlaneseq  ;;  %v686_v29 = vmov 0.0   ;;  %vm295_vm5 = vcmask 64512  }
  0x18   : > { %v751_v3 = vld [vmem:[%s252_s12] sm:$0xff]  ;;  %602 = vset.pattern.permute.xlu0 %v685_v5  ;;  %603 = vset.pattern.permute.xlu1 %v685_v5  ;;  %v283_v9 = vld [vmem:[#allocation3 + $0x60] sm:$0xff]  ;;  %v281_v12 = vld [vmem:[#allocation3 + $0x50] sm:$0xff]  ;;  %v687_v37 = vmov 1.0   ;;  %p564_p8 = scmp.ne.s32.totalorder %s728_s22, 3 }
  0x19   : > { %v286_v4 = vld [vmem:[#allocation3 + $0x78] sm:$0xff]  ;;  %vm354_vm0 = vcmp.eq.s32.totalorder %v751_v3, 1  ;;  %266 = vperm.xlu0 %602, %v262_v2   ;;  %vm341_vm1 = vcmp.eq.s32.totalorder %v751_v3, 0  ;;  %604 = vset.pattern.permute.xlu2 %v685_v5  ;;  %vm367_vm2 = vcmp.eq.s32.totalorder %v751_v3, 2  ;;  %v280_v14 = vld [vmem:[#allocation3 + $0x48] sm:$0xff]  ;;  %vm406_vm3 = vcmp.eq.s32.totalorder %v751_v3, 5 }
  0x1a   : > { %319 = vmatpush.msra.mxu1 %v286_v4  ;;  %v355_v8 = vsel %vm354_vm0, 1, %v685_v5  ;;  %v282_v10 = vld [vmem:[#allocation3 + $0x58] sm:$0xff]  ;;  %v342_v11 = vsel %vm341_vm1, 1, %v685_v5  ;;  %v368_v13 = vsel %vm367_vm2, 1, %v685_v5  ;;  %v279_v15 = vld [vmem:[#allocation3 + $0x40] sm:$0xff]  ;;  %v407_v17 = vsel %vm406_vm3, 1, %v685_v5 }
  0x1b   : > { %357 = vperm.xlu1 %603, %v355_v8   ;;  %v278_v16 = vld [vmem:[#allocation3 + $0x38] sm:$0xff]  ;;  %v277_v18 = vld [vmem:[#allocation3 + $0x30] sm:$0xff]  ;;  %v276_v19 = vld [vmem:[#allocation3 + $0x28] sm:$0xff]  ;;  %v289_v25 = vshrl.u32 %v263_v24, 7  ;;  %vm419_vm6 = vcmp.eq.s32.totalorder %v751_v3, 6  ;;  %vm380_vm7 = vcmp.eq.s32.totalorder %v751_v3, 3 }
  0x1c   : > { %320 = vmatpush.msra.mxu1 %v285_v6  ;;  %v275_v20 = vld [vmem:[#allocation3 + $0x20] sm:$0xff]  ;;  %v274_v21 = vld [vmem:[#allocation3 + $0x18] sm:$0xff]  ;;  %v273_v22 = vld [vmem:[#allocation3 + $0x10] sm:$0xff]  ;;  %v420_v31 = vsel %vm419_vm6, 1, %v685_v5  ;;  %v381_v32 = vsel %vm380_vm7, 1, %v685_v5  ;;  %vm393_vm8 = vcmp.eq.s32.totalorder %v751_v3, 4 }
  0x1d   : > { %v272_v23 = vld [vmem:[#allocation3 + $0x8] sm:$0xff]  ;;  %v605_v26 = vld [vmem:[%s255_s6] ss:$0 sm:$0xff]  ;;  %v271_v28 = vld [vmem:[#allocation3] sm:$0xff]  ;;  %383 = vperm.xlu2 %604, %v381_v32   ;;  %v394_v33 = vsel %vm393_vm8, 1, %v685_v5  ;;  %vm432_vm9 = vcmp.eq.s32.totalorder %v751_v3, 7 }
  0x1e   : > { %321 = vmatpush.msra.mxu1 %v284_v7  ;;  %v294_v27 = vld [vmem:[#allocation2] sm:$0xff]  ;;  %vm291_vm4 = vcmp.eq.s32.totalorder %v289_v25, %v605_v26  ;;  %v433_v34 = vsel %vm432_vm9, 1, %v685_v5  ;;  %v264_v35 = vand.u32 127, %v263_v24  ;;  %vm445_vm3 = vcmask 1040384  }
  0x1f   : > { %314 = vmatpush.msra.mxu0 %v294_v27  ;;  %v561_v30 = vsel %vm291_vm4, 1.0, %v686_v29  ;;  %vm447_vm4 = vcmask 1041408   ;;  %vm451_vm6 = vcmask 1043456   ;;  %vm453_vm7 = vcmask 1044480  }
  0x20   : > { %322 = vmatpush.msra.mxu1 %v283_v9  ;;  %562 = vmatmul.msk.f32.vlgmr.msra.gmra.mxu0 %vm295_vm5, %v561_v30  ;;  %vm449_vm5 = vcmask 1042432   ;;  %vm455_vm8 = vcmask 1045504   ;;  %vm457_vm9 = vcmask 1046528  }
  0x21   : > { %344 = vperm.xlu0 %602, %v342_v11  }
  0x22   : > { %323 = vmatpush.msra.mxu1 %v282_v10 }
  0x23   : > { %370 = vperm.xlu1 %603, %v368_v13  }
  0x24   : > { %324 = vmatpush.msra.mxu1 %v281_v12 }
  0x25   : > { %396 = vperm.xlu2 %604, %v394_v33  }
  0x26   : > { %325 = vmatpush.msra.mxu1 %v280_v14 }
  0x28   : > { %326 = vmatpush.msra.mxu1 %v279_v15 }
  0x29   : > { %409 = vperm.xlu0 %602, %v407_v17  }
  0x2a   : > { %327 = vmatpush.msra.mxu1 %v278_v16 }
  0x2b   : > { %422 = vperm.xlu1 %603, %v420_v31  }
  0x2c   : > { %328 = vmatpush.msra.mxu1 %v277_v18 }
  0x2d   : > { %435 = vperm.xlu2 %604, %v433_v34  }
  0x2e   : > { %329 = vmatpush.msra.mxu1 %v276_v19 }
  0x30   : > { %330 = vmatpush.msra.mxu1 %v275_v20 }
  0x32   : > { %331 = vmatpush.msra.mxu1 %v274_v21 }
  0x34   : > { %332 = vmatpush.msra.mxu1 %v273_v22 }
  0x36   : > { %333 = vmatpush.msra.mxu1 %v272_v23 }
  0x38   : > { %334 = vmatpush.msra.mxu1 %v271_v28 }
  0x77   : > { %v384_v39 = vpop.permute.xlu2 %383 }
  0x78   : > { %vm385_vm15 = vcmp.eq.s32.totalorder %v384_v39, 1 }
  0x7f   : > { %v397_v42 = vpop.permute.xlu2 %396 }
  0x80   : > { %vm398_vm0 = vcmp.eq.s32.totalorder %v397_v42, 1 }
  0x87   : > { %v436_v46 = vpop.permute.xlu2 %435 }
  0x88   : > { %vm437_vm2 = vcmp.eq.s32.totalorder %v436_v46, 1  ;;  %v459_v46 = vld [vmem:[#allocation6] sm:$0xff] }
  0x8b   : > { %v267_v36 = vpop.permute.xlu0 %266 }
  0x8c   : > { %vm268_vm10 = vcmp.eq.s32.totalorder %v264_v35, %v267_v36 }
  0x8d   : > { %563 = vmatmul.msk.f32.vlgmr.msra.gmra.mxu1 %vm268_vm10, %v687_v37  ;;  %v358_v38 = vpop.permute.xlu1 %357 }
  0x8e   : > { %vm359_vm11 = vcmp.eq.s32.totalorder %v358_v38, 1 }
  0x93   : > { %v345_v40 = vpop.permute.xlu0 %344 }
  0x94   : > { %vm346_vm12 = vcmp.eq.s32.totalorder %v345_v40, 1 }
  0x95   : > { %v371_v41 = vpop.permute.xlu1 %370 }
  0x96   : > { %vm372_vm14 = vcmp.eq.s32.totalorder %v371_v41, 1 }
  0x9b   : > { %v410_v43 = vpop.permute.xlu0 %409 }
  0x9c   : > { %vm411_vm13 = vcmp.eq.s32.totalorder %v410_v43, 1 }
  0x9d   : > { %v316_v44 = vpop.f32.mrf.mxu0  ;;  %v423_v45 = vpop.permute.xlu1 %422 }
  0x9e   : > { %vm424_vm1 = vcmp.eq.s32.totalorder %v423_v45, 1 }
 0x10a   : > { %v336_v47 = vpop.f32.mrf.mxu1 }
 0x10b   : > { %v337_v48 = vadd.f32 %v336_v47, %v316_v44 }
 0x10d   : > { %339 = vst [vmem:[#allocation2] sm:$0xff] %v337_v48  ;;  %v347_v49 = vsel %vm346_vm12, %v337_v48, -inf  ;;  %v360_v50 = vsel %vm359_vm11, %v337_v48, -inf  ;;  %v373_v51 = vsel %vm372_vm14, %v337_v48, -inf  ;;  %v386_v52 = vsel %vm385_vm15, %v337_v48, -inf }
 0x10e   : > { %v348_v53 = vrot.slane %v347_v49, 4  ;;  %v361_v54 = vrot.slane %v360_v50, 4  ;;  %v374_v55 = vrot.slane %v373_v51, 4  ;;  %v387_v56 = vrot.slane %v386_v52, 4 }
 0x10f   : > { %v399_v57 = vsel %vm398_vm0, %v337_v48, -inf  ;;  %v412_v58 = vsel %vm411_vm13, %v337_v48, -inf  ;;  %v425_v59 = vsel %vm424_vm1, %v337_v48, -inf  ;;  %v438_v60 = vsel %vm437_vm2, %v337_v48, -inf }
 0x110   : > { %v349_v61 = vmax.f32 %v347_v49, %v348_v53  ;;  %v362_v62 = vmax.f32 %v360_v50, %v361_v54  ;;  %v375_v63 = vmax.f32 %v373_v51, %v374_v55  ;;  %v388_v0 = vmax.f32 %v386_v52, %v387_v56 }
 0x111   : > { %v400_v1 = vrot.slane %v399_v57, 4  ;;  %v413_v2 = vrot.slane %v412_v58, 4  ;;  %v426_v3 = vrot.slane %v425_v59, 4  ;;  %v439_v4 = vrot.slane %v438_v60, 4 }
 0x112   : > { %v350_v5 = vrot.slane %v349_v61, 2  ;;  %v363_v6 = vrot.slane %v362_v62, 2  ;;  %v376_v7 = vrot.slane %v375_v63, 2  ;;  %v389_v8 = vrot.slane %v388_v0, 2 }
 0x113   : > { %v401_v9 = vmax.f32 %v399_v57, %v400_v1  ;;  %v414_v10 = vmax.f32 %v412_v58, %v413_v2  ;;  %v427_v11 = vmax.f32 %v425_v59, %v426_v3  ;;  %v440_v12 = vmax.f32 %v438_v60, %v439_v4 }
 0x114   : > { %v351_v13 = vmax.f32 %v349_v61, %v350_v5  ;;  %v364_v14 = vmax.f32 %v362_v62, %v363_v6  ;;  %v377_v15 = vmax.f32 %v375_v63, %v376_v7  ;;  %v390_v16 = vmax.f32 %v388_v0, %v389_v8 }
 0x115   : > { %v402_v17 = vrot.slane %v401_v9, 2  ;;  %v415_v18 = vrot.slane %v414_v10, 2  ;;  %v428_v19 = vrot.slane %v427_v11, 2  ;;  %v441_v20 = vrot.slane %v440_v12, 2 }
 0x116   : > { %v352_v21 = vrot.slane %v351_v13, 1  ;;  %v365_v22 = vrot.slane %v364_v14, 1  ;;  %v378_v23 = vrot.slane %v377_v15, 1  ;;  %v391_v24 = vrot.slane %v390_v16, 1 }
 0x117   : > { %v403_v25 = vmax.f32 %v401_v9, %v402_v17  ;;  %v416_v26 = vmax.f32 %v414_v10, %v415_v18  ;;  %v429_v27 = vmax.f32 %v427_v11, %v428_v19  ;;  %v442_v28 = vmax.f32 %v440_v12, %v441_v20 }
 0x118   : > { %v353_v29 = vmax.f32 %v351_v13, %v352_v21  ;;  %v366_v30 = vmax.f32 %v364_v14, %v365_v22  ;;  %v379_v31 = vmax.f32 %v377_v15, %v378_v23  ;;  %v392_v36 = vmax.f32 %v390_v16, %v391_v24 }
 0x119   : > { %v404_v32 = vrot.slane %v403_v25, 1  ;;  %v417_v33 = vrot.slane %v416_v26, 1  ;;  %v430_v34 = vrot.slane %v429_v27, 1  ;;  %v443_v37 = vrot.slane %v442_v28, 1 }
 0x11a   : > { %v446_v35 = vsel %vm445_vm3, %v353_v29, %v366_v30 }
 0x11b   : > { %v405_v38 = vmax.f32 %v403_v25, %v404_v32  ;;  %v448_v39 = vsel %vm447_vm4, %v446_v35, %v379_v31  ;;  %v418_v40 = vmax.f32 %v416_v26, %v417_v33  ;;  %v431_v42 = vmax.f32 %v429_v27, %v430_v34 }
 0x11c   : > { %v450_v41 = vsel %vm449_vm5, %v448_v39, %v392_v36  ;;  %v444_v44 = vmax.f32 %v442_v28, %v443_v37 }
 0x11d   : > { %v452_v43 = vsel %vm451_vm6, %v450_v41, %v405_v38 }
 0x11e   : > { %v454_v45 = vsel %vm453_vm7, %v452_v43, %v418_v40 }
 0x11f   : > { %v456_v47 = vsel %vm455_vm8, %v454_v45, %v431_v42  ;;  %465 = sbr.rel (%p564_p8) target bundleno = 302 (0x12e), region = 52 }
 0x120   : > { %v458_v48 = vsel %vm457_vm9, %v456_v47, %v444_v44 }
 0x121   : > { %v460_v49 = vmax.f32 %v459_v46, %v458_v48 }
 0x123   : > { %461 = vst [vmem:[#allocation6] sm:$0xff] %v460_v49 }
 0x124   : > { %v467_v51 = vld [vmem:[%s794_s4] sm:$0xff] }
 0x12a   : > { %v466_v50 = vld [vmem:[#allocation6] sm:$0xff] }
 0x12b   : > { %v468_v52 = vmax.f32 %v466_v50, %v467_v51 }
 0x12d   : > { %469 = vst [vmem:[#allocation6] sm:$0xff] %v468_v52 }
 0x12e PF: > { %p583_p9 = scmp.eq.s32.totalorder %s728_s22, 3  ;;  %s688_s17 = smov [#allocation6]  }
 0x12f   : > { %s476_s19 = sshll.u32 %s688_s17, 4  ;;  %s478_s23 = sshll.u32 %s795_s5, 4  ;;  %s477_s19 = int_to_ptr.vmem [resolvable:$true] %s476_s19  ;;  %s479_s23 = int_to_ptr.hbm [resolvable:$true] %s478_s23 }
 0x130   : > { %574 = dma.vmem_to_hbm [thread:$0]  (%p583_p9), %s477_s19, 128, %s479_s23, [#allocation5]  }
 0x131   : > { %673 = dma.done.wait (%p583_p9), [#allocation5], 128  }
 0x132   : > { %675 = vsyncadd (%p583_p9), [#allocation5], 4294967168 }
 0x133 PF: > { %s17_s18 = sadd.s32 1, %s678_s18  }
 0x134   : > { %p14_p10 = scmp.ge.s32.totalorder %s17_s18, 6  }
 0x136   :  { %16 = sbr.rel (!%p14_p10) target bundleno = 2 (0x2), region = 86 }
 0x13b   :  { %492 = vsyncpa [#allocation4], 1 }
 0x13c   :  { %494 = vsyncpa [#allocation4 + $0x1], 1 }
 0x13d   :  { %495 = vsyncpa [#allocation5], 1 }
 0x13e   :  { %497 = vsyncpa [#allocation5 + $0x1], 1 }

</bundles_post_ra>
